<compile_context>
chip_gen: v6e
topology: v6e:2x2x1
jax: 0.10.0
libtpu: 0.0.40
codegen_flags: <defaults>
</compile_context>

<pallas_src>
import jax
import jax.numpy as jnp
from jax.experimental import pallas as pl
from jax.experimental.pallas import tpu as pltpu


def odeblock_kernel(dt_ref, x_ref, wt_ref, b_ref, o_ref):
    # dt_ref: SMEM (1,)      -- precomputed dt = t1 - t0
    # x_ref:  VMEM (TM, N)   -- row-tile of the input
    # wt_ref: VMEM (N, N)    -- W^T, resident across the whole grid
    # b_ref:  VMEM (1, N)    -- bias (kept 2-D for a legal TPU layout)
    # o_ref:  VMEM (TM, N)   -- output tile
    dt = dt_ref[0]
    acc = jnp.dot(x_ref[...], wt_ref[...], preferred_element_type=jnp.float32)
    o_ref[...] = (dt * (acc + b_ref[...])).astype(o_ref.dtype)


def prepare_odeblock_params(weight, bias, times):
    """One-time parameter prep, hoisted out of the per-call hot path.

    weight: (N, N) float32, PyTorch nn.Linear layout (out_features x in_features)
    bias:   (N,)   float32
    times:  (2,)   float32 ([0, t])
    Returns (wt, b2d, dt): W^T as (N, N), bias as (1, N), dt as a (1,) scalar.
    """
    wt = jnp.asarray(weight, jnp.float32).T            # materialized once, reused per call
    b2d = jnp.asarray(bias, jnp.float32).reshape(1, -1)
    dt = (times[1] - times[0]).astype(jnp.float32).reshape(1)
    return wt, b2d, dt


_SMALL_B = 256  # below this, a single grid point beats row tiling


def odeblock_forward(x, wt, b2d, dt):
    """Computes dt * (x @ W.T + b)  ==  odeint(Linear, x, [0, t], 'euler')[1] - x."""
    B, N = x.shape
    assert wt.shape == (N, N) and b2d.shape == (1, N)

    if B <= _SMALL_B:
        # Small-batch fast path: one grid point, block shapes equal the full
        # array dims (legal under the (8,128) rule) -> no padding, no slicing.
        return pl.pallas_call(
            odeblock_kernel,
            out_shape=jax.ShapeDtypeStruct((B, N), x.dtype),
            grid=(1,),
            in_specs=[
                pl.BlockSpec(memory_space=pltpu.SMEM),       # dt scalar
                pl.BlockSpec((B, N), lambda i: (0, 0)),      # x
                pl.BlockSpec((N, N), lambda i: (0, 0)),      # W^T
                pl.BlockSpec((1, N), lambda i: (0, 0)),      # bias
            ],
            out_specs=pl.BlockSpec((B, N), lambda i: (0, 0)),
        )(dt, x, wt, b2d)

    # Large-batch path: tile the rows, keep W^T / bias resident + single-buffered.
    TM = 512 if B >= 512 else 128
    BP = pl.cdiv(B, TM) * TM
    x_p = x if BP == B else jnp.zeros((BP, N), x.dtype).at[:B].set(x)

    elem = jnp.dtype(x.dtype).itemsize
    # Double-buffered x + out tiles, single-buffered resident W^T + bias.
    needed = 2 * 2 * TM * N * elem + (N * N + N) * elem
    # Explicit limit so this tiling also fits v5e's 16 MiB default scoped VMEM;
    # capped at v7x's 64 MiB physical per-TC VMEM.
    vmem_limit = int(min(max(4 * needed, 32 << 20), 64 << 20))

    out_p = pl.pallas_call(
        odeblock_kernel,
        out_shape=jax.ShapeDtypeStruct((BP, N), x.dtype),
        grid=(BP // TM,),
        in_specs=[
            pl.BlockSpec(memory_space=pltpu.SMEM),                 # dt scalar
            pl.BlockSpec((TM, N), lambda i: (i, 0)),               # x row-tile
            pl.BlockSpec((N, N), lambda i: (0, 0),                 # W^T: resident,
                         pipeline_mode=pl.Buffered(1)),            #   never re-fetched
            pl.BlockSpec((1, N), lambda i: (0, 0),                 # bias: resident
                         pipeline_mode=pl.Buffered(1)),
        ],
        out_specs=pl.BlockSpec((TM, N), lambda i: (i, 0)),
        compiler_params=pltpu.CompilerParams(
            # Only meaningful with >= 2 row tiles (true on this path); note 2-TC
            # sharding duplicates the resident W^T DMA / VMEM footprint.
            dimension_semantics=("parallel",),
            vmem_limit_bytes=vmem_limit,
        ),
    )(dt, x_p, wt, b2d)
    # TODO(synk): add a K-reduction grid axis + f32 acc scratch (and bf16 MXU
    # inputs) once N grows past ~2048, where the resident f32 W^T no longer
    # fits v7x's 64 MiB VMEM and the kernel becomes compute-bound.
    return out_p if BP == B else out_p[:B]


if __name__ == "__main__":
    neuron_number = 32
    batch = 8
    t_final = 0.5

    key = jax.random.PRNGKey(0)
    kx, kw, kb, kx2 = jax.random.split(key, 4)

    # Deterministic synthetic parameters (shapes from nn.Linear(N, N)).
    bound = 1.0 / jnp.sqrt(jnp.float32(neuron_number))
    x = jax.random.normal(kx, (batch, neuron_number), dtype=jnp.float32)
    weight = jax.random.uniform(
        kw, (neuron_number, neuron_number), jnp.float32, -bound, bound)
    bias = jax.random.uniform(kb, (neuron_number,), jnp.float32, -bound, bound)
    times = jnp.array([0.0, t_final], dtype=jnp.float32)

    # One-time parameter prep (hoisted out of the per-call hot path).
    wt, b2d, dt = prepare_odeblock_params(weight, bias, times)

    # Small-batch fast path.
    out = jax.block_until_ready(odeblock_forward(x, wt, b2d, dt))
    ref = (times[1] - times[0]) * (x @ weight.T + bias)
    assert out.shape == (batch, neuron_number)
    assert jnp.allclose(out, ref, atol=1e-5, rtol=1e-5)

    # Also exercise the large-batch row-tiled path (resident, single-buffered
    # weight, row padding + final slice).
    big_batch = 300
    xb = jax.random.normal(kx2, (big_batch, neuron_number), dtype=jnp.float32)
    outb = jax.block_until_ready(odeblock_forward(xb, wt, b2d, dt))
    refb = (times[1] - times[0]) * (xb @ weight.T + bias)
    assert outb.shape == (big_batch, neuron_number)
    assert jnp.allclose(outb, refb, atol=1e-5, rtol=1e-5)

    print("KERNEL_OK")
</pallas_src>

<mosaic_0001>
module attributes {stable_mosaic.version = 11 : i64} {
  func.func @odeblock_kernel(%arg0: i32, %arg1: memref<1xf32, #tpu.memory_space<smem>>, %arg2: memref<8x32xf32, #tpu.memory_space<vmem>>, %arg3: memref<32x32xf32, #tpu.memory_space<vmem>>, %arg4: memref<1x32xf32, #tpu.memory_space<vmem>>, %arg5: memref<8x32xf32, #tpu.memory_space<vmem>>) attributes {dimension_semantics = [#tpu.dimension_semantics<arbitrary>], iteration_bounds = array<i64: 1>, scalar_prefetch = 0 : i64, scratch_operands = 0 : i64, tpu.core_type = #tpu.core_type<tc>, window_params = [{transform_indices = @transform_0, window_bounds = array<i64: 1>}, {pipeline_mode = #tpu.pipeline_mode<synchronous>, transform_indices = @transform_1, window_bounds = array<i64: 8, 32>}, {pipeline_mode = #tpu.pipeline_mode<synchronous>, transform_indices = @transform_2, window_bounds = array<i64: 32, 32>}, {pipeline_mode = #tpu.pipeline_mode<synchronous>, transform_indices = @transform_3, window_bounds = array<i64: 1, 32>}, {pipeline_mode = #tpu.pipeline_mode<synchronous>, transform_indices = @transform_4, window_bounds = array<i64: 8, 32>}]} {
    %c0 = arith.constant 0 : index
    %0 = memref.load %arg1[%c0] : memref<1xf32, #tpu.memory_space<smem>>
    %c0_0 = arith.constant 0 : index
    %c0_1 = arith.constant 0 : index
    %1 = vector.load %arg2[%c0_0, %c0_1] : memref<8x32xf32, #tpu.memory_space<vmem>>, vector<8x32xf32>
    %c0_2 = arith.constant 0 : index
    %c0_3 = arith.constant 0 : index
    %2 = vector.load %arg3[%c0_2, %c0_3] : memref<32x32xf32, #tpu.memory_space<vmem>>, vector<32x32xf32>
    %cst = arith.constant dense<0.000000e+00> : vector<8x32xf32>
    %3 = tpu.matmul %1, %2, %cst {dimension_numbers = #tpu.dot_dimension_numbers<[1], [0], [0], [1], [0, 0, 1, 1], [], []>} : vector<8x32xf32>, vector<32x32xf32>, vector<8x32xf32> -> vector<8x32xf32>
    %c0_4 = arith.constant 0 : index
    %c0_5 = arith.constant 0 : index
    %4 = vector.load %arg4[%c0_4, %c0_5] : memref<1x32xf32, #tpu.memory_space<vmem>>, vector<1x32xf32>
    %5 = vector.broadcast %4 : vector<1x32xf32> to vector<8x32xf32>
    %6 = arith.addf %3, %5 : vector<8x32xf32>
    %7 = vector.broadcast %0 : f32 to vector<8x32xf32>
    %8 = arith.mulf %7, %6 : vector<8x32xf32>
    %c0_6 = arith.constant 0 : index
    %c0_7 = arith.constant 0 : index
    %9 = vector.load %arg5[%c0_6, %c0_7] : memref<8x32xf32, #tpu.memory_space<vmem>>, vector<8x32xf32>
    tpu.vector_store %arg5[%c0_6, %c0_7], %8 {strides = array<i32>} : memref<8x32xf32, #tpu.memory_space<vmem>>, vector<8x32xf32>,
    return
  }
  func.func @transform_0(%arg0: i32) -> i32 {
    %c0_i32 = arith.constant 0 : i32
    %c0_i32_0 = arith.constant 0 : i32
    return %c0_i32 : i32
  }
  func.func @transform_1(%arg0: i32) -> (i32, i32) {
    %c0_i32 = arith.constant 0 : i32
    %c0_i32_0 = arith.constant 0 : i32
    %c0_i32_1 = arith.constant 0 : i32
    return %c0_i32, %c0_i32_0 : i32, i32
  }
  func.func @transform_2(%arg0: i32) -> (i32, i32) {
    %c0_i32 = arith.constant 0 : i32
    %c0_i32_0 = arith.constant 0 : i32
    %c0_i32_1 = arith.constant 0 : i32
    return %c0_i32, %c0_i32_0 : i32, i32
  }
  func.func @transform_3(%arg0: i32) -> (i32, i32) {
    %c0_i32 = arith.constant 0 : i32
    %c0_i32_0 = arith.constant 0 : i32
    %c0_i32_1 = arith.constant 0 : i32
    return %c0_i32, %c0_i32_0 : i32, i32
  }
  func.func @transform_4(%arg0: i32) -> (i32, i32) {
    %c0_i32 = arith.constant 0 : i32
    %c0_i32_0 = arith.constant 0 : i32
    %c0_i32_1 = arith.constant 0 : i32
    return %c0_i32, %c0_i32_0 : i32, i32
  }
}

</mosaic_0001>

<bundles_post_ra>
// kernel: tpu_custom_call.1
= control target key start
LH: loop header
LB: loop body
LE: loop exit
PB: predicated region body
PF: predicated region fallthrough
CT: control target
= control target key end

     0   :  { %10 = vsyncpa [#allocation4], 0  ;;  %s289_s0 = inlined_call_operand.<no memory space> [shape: f32[1], index: 0, kind: input, shape index: {}]   ;;  %s290_s1 = inlined_call_operand.hbm [shape: f32[8,32], index: 1, kind: input, shape index: {}]   ;;  %s291_s2 = inlined_call_operand.hbm [shape: f32[32,32], index: 2, kind: input, shape index: {}]   ;;  %s292_s3 = inlined_call_operand.vmem [shape: f32[1,32], index: 3, kind: input, shape index: {}]   ;;  %s293_s4 = inlined_call_operand.hbm [shape: f32[8,32], index: 4, kind: output, shape index: {}]  }
   0x1   :  { %11 = vsyncpa [#allocation7], 0 }
   0x2   :  { %12 = vsyncpa [#allocation5], 0  ;;  %s242_s15 = smov [#allocation3]   ;;  %s243_s17 = smov [#allocation6]  }
   0x3   :  { %s21_s16 = sshll.u32 %s242_s15, 4  ;;  %s30_s18 = sshll.u32 %s243_s17, 4  ;;  %s22_s16 = int_to_ptr.vmem [resolvable:$true] %s21_s16  ;;  %s31_s18 = int_to_ptr.vmem [resolvable:$true] %s30_s18 }
   0x4   :  { %s184_s19 = scalar_lea.vmem %s22_s16, 128  ;;  %p189_p1 = scmp.lt.s32.totalorder %s22_s16, %s22_s16 }
   0x5   :  { %p185_p0 = scmp.ne.s32.totalorder %s22_s16, %s184_s19  ;;  %p190_p2 = scmp.lt.s32.totalorder %s184_s19, %s184_s19 }
   0x7   :  { %p191_p3 = por %p190_p2, %p189_p1 }
   0x9   :  { %p192_p4 = pnand %p191_p3, %p185_p0 }
   0xb   :  { %195 = shalt.err (!%p192_p4)
}
   0xc   :  { %24 = dma.hbm_to_vmem [thread:$0]  %s290_s1, 128, %s22_s16, [#allocation4]  }
   0xd   :  { %s204_s22 = scalar_lea.vmem %s31_s18, 512  ;;  %p209_p6 = scmp.lt.s32.totalorder %s31_s18, %s31_s18 }
   0xe   :  { %p205_p5 = scmp.ne.s32.totalorder %s31_s18, %s204_s22  ;;  %p210_p7 = scmp.lt.s32.totalorder %s204_s22, %s204_s22 }
  0x10   :  { %p211_p8 = por %p210_p7, %p209_p6 }
  0x12   :  { %p212_p9 = pnand %p211_p8, %p205_p5 }
  0x14   :  { %215 = shalt.err (!%p212_p9)
}
  0x15   :  { %s244_s23 = smov 128   ;;  %s245_s24 = smov 8  }
  0x16   :  { %36 = dma.hbm_to_vmem [thread:$0]  %s291_s2, 512, %s31_s18, [#allocation7], %s244_s23, %s244_s23, %s245_s24  }
  0x17   :  { %236 = dma.done.wait [#allocation4], 128  }
  0x18   :  { %237 = vsyncadd [#allocation4], 4294967168 }
  0x19   :  { %238 = dma.done.wait [#allocation7], 512  }
  0x1a   :  { %239 = vsyncadd [#allocation7], 4294966784  ;;  %v246_v0 = vmov 0.0   ;;  %vm247_vm0 = vmmov 0   ;;  %v50_v1 = vld [vmem:[#allocation6 + $0x18] sm:$0xff]  ;;  %v49_v2 = vld [vmem:[#allocation6 + $0x10] sm:$0xff]  ;;  %v132_v8 = vstv %s289_s0 }
  0x1b   :  { %158 = vmatprep.subr.mxu0 %v246_v0  ;;  %166 = vmatprep.mubr.msk.f32.mxu0 %vm247_vm0, %v246_v0  ;;  %v48_v3 = vld [vmem:[#allocation6 + $0x8] sm:$0xff]  ;;  %v47_v4 = vld [vmem:[#allocation6] sm:$0xff]  ;;  %v46_v5 = vld [vmem:[#allocation3] sm:$0xff]  ;;  %vm58_vm1 = vcmask 261120   ;;  %s248_s29 = smov [#allocation8]  }
  0x1c   :  { %159 = vmatpush3.msra.mxu0 %v50_v1  ;;  %v151_v6 = vld [vmem:[%s292_s3] ss:$0 sm:$0xff]  ;;  %s141_s30 = sshll.u32 %s248_s29, 4  ;;  %s142_s30 = int_to_ptr.vmem [resolvable:$true] %s141_s30 }
  0x1d   :  { %160 = vmatprep.subr.mxu0 %v246_v0  ;;  %s216_s5 = scalar_lea.vmem %s142_s30, 128  ;;  %p221_p11 = scmp.lt.s32.totalorder %s142_s30, %s142_s30 }
  0x1e   :  { %161 = vmatpush3.msra.mxu0 %v49_v2  ;;  %p217_p10 = scmp.ne.s32.totalorder %s142_s30, %s216_s5  ;;  %p222_p12 = scmp.lt.s32.totalorder %s216_s5, %s216_s5 }
  0x1f   :  { %162 = vmatprep.subr.mxu0 %v246_v0 }
  0x20   :  { %163 = vmatpush3.msra.mxu0 %v48_v3  ;;  %p223_p13 = por %p222_p12, %p221_p11 }
  0x21   :  { %164 = vmatprep.subr.mxu0 %v246_v0 }
  0x22   :  { %165 = vmatpush3.msra.mxu0 %v47_v4  ;;  %p224_p0 = pnand %p223_p13, %p217_p10 }
  0x23   :  { %167 = vmatmul.mubr.msk.f32.vlgmr.msra.gmra.mxu0 %vm58_vm1, %v46_v5 }
  0xe3   :  { %v128_v7 = vpop.f32.mrf.mxu0 }
  0xe4   :  { %v129_v9 = vadd.f32 %v151_v6, %v128_v7 }
  0xe5   :  { %v168_v10 = vpop.f32.mrf.mxu0 }
  0xe6   :  { %v133_v11 = vmul.f32 %v132_v8, %v129_v9 }
  0xe8   :  { %134 = vst.msk [vmem:[#allocation8] sm:$0xff] %vm58_vm1, %v133_v11 }
  0xe9   :  { %227 = shalt.err (!%p224_p0)
}
  0xea   :  { %144 = dma.vmem_to_hbm [thread:$0]  %s142_s30, 128, %s293_s4, [#allocation5]  }
  0xeb   :  { %240 = dma.done.wait [#allocation5], 128  }
  0xec   :  { %241 = vsyncadd [#allocation5], 4294967168 }
  0xed   :  { %148 = vsyncpa [#allocation4], 1 }
  0xee   :  { %149 = vsyncpa [#allocation7], 1 }
  0xef   :  { %150 = vsyncpa [#allocation5], 1 }

</bundles_post_ra>
